<compile_context>
chip_gen: v7x
topology: tpu7x:2x2x1
jax: 0.10.0
libtpu: 0.0.40
codegen_flags: <defaults>
</compile_context>

<pallas_src>
import functools

import jax
import jax.numpy as jnp
import numpy as np
from jax.experimental import pallas as pl
from jax.experimental.pallas import tpu as pltpu

_LANE = 128


def _round_up(a, b):
    return -(-a // b) * b


# ----------------------------------------------------------------------------
# Host-side PE table (float64, same math as the PyTorch module), cached.
# ----------------------------------------------------------------------------
@functools.lru_cache(maxsize=None)
def _pos_encoding_table(L, d):
    """Interleaved sin/cos PE table, shape (L, d), float64.

    pe[t, 2k]   = sin(w_k * t),  pe[t, 2k+1] = cos(w_k * t),
    w_k = 1 / (10^(2k) / d)
    """
    t = np.arange(L, dtype=np.float64)[:, None]              # (L, 1)
    k = np.arange(d // 2, dtype=np.float64)[None, :]          # (1, d//2)
    with np.errstate(over="ignore", divide="ignore"):          # 10**(2k) -> inf for huge k
        w = 1.0 / (np.power(10.0, 2.0 * k) / float(d))
    arg = w * t                                               # (L, d//2)
    pe = np.empty((L, d), dtype=np.float64)
    pe[:, 0::2] = np.sin(arg)
    pe[:, 1::2] = np.cos(arg)
    return pe


@functools.lru_cache(maxsize=None)
def _pe_rows(L, N, d, dtype_name):
    """Static PE pre-broadcast over batch, flattened to (L*N, d), cached on device."""
    tbl = _pos_encoding_table(L, d).astype(np.dtype(dtype_name))
    pe = jnp.asarray(tbl)                                     # (L, d)
    return jnp.broadcast_to(pe[:, None, :], (L, N, d)).reshape(L * N, d)


# ----------------------------------------------------------------------------
# Kernels (pure add / concat of the streamed, already-broadcast PE tile).
# ----------------------------------------------------------------------------
def _add_kernel(x_ref, pe_ref, o_ref):
    # x_ref, pe_ref, o_ref: (tile_rows, D)
    o_ref[...] = x_ref[...] + pe_ref[...]


def _concat_aligned_kernel(x_ref, pe_ref, o_ref):
    # D % 128 == 0: two lane-aligned, unmasked stores; no concat temporary.
    d = x_ref.shape[-1]
    o_ref[:, :d] = x_ref[...]
    o_ref[:, d:] = pe_ref[...]


def _concat_kernel(x_ref, pe_ref, o_ref):
    # Unaligned D: single full-width store of the concatenated tile.
    o_ref[...] = jnp.concatenate([x_ref[...], pe_ref[...]], axis=-1)


# ----------------------------------------------------------------------------
# Wrapper
# ----------------------------------------------------------------------------
def positional_encoder(x, depth=256, concatenate=True, *,
                       tile_rows=None, vmem_budget_bytes=None):
    """Pallas equivalent of PositionalEncoder.forward.

    x: (L, N, D) array.  Returns (L, N, D + depth) if concatenate else (L, N, D).
    """
    if depth % 2 != 0:
        raise ValueError(f"depth {depth} can't be odd")
    L, N, D = x.shape
    assert D % 2 == 0

    d_pe = depth if concatenate else D
    d_out = D + depth if concatenate else D
    if concatenate:
        kernel = _concat_aligned_kernel if D % _LANE == 0 else _concat_kernel
    else:
        kernel = _add_kernel

    dtype = jnp.dtype(x.dtype)
    itemsize = dtype.itemsize
    sublane = max(8, (8 * 4) // itemsize)      # 8 f32, 16 bf16, 32 int8/fp8

    # Sublane-dense flattening: (L, N, D) -> (L*N, D) is a free row-major reshape.
    R = L * N
    x2d = x.reshape(R, D)
    pe = _pe_rows(L, N, d_pe, dtype.name)      # (L*N, d_pe), cached constant

    # --- VMEM-padded bytes per row across (x block + pe block + out block) ---
    bytes_per_row = (_round_up(D, _LANE) + _round_up(d_pe, _LANE)
                     + _round_up(d_out, _LANE)) * itemsize

    try:
        phys_vmem = int(getattr(pltpu.get_tpu_info(), "vmem_capacity_bytes"))
    except Exception:
        phys_vmem = 64 << 20                   # conservative (v7x per-TC physical)
    if vmem_budget_bytes is None:
        # ~half of physical VMEM for the double-buffered working set, 48 MiB cap
        # (-> ~48 MiB on v5e/v6e's 128 MiB, ~32 MiB on v7x's 64 MiB).
        vmem_budget_bytes = min(48 << 20, phys_vmem // 2)

    if tile_rows is None:
        tile_rows = max(sublane,
                        (vmem_budget_bytes // (2 * bytes_per_row) // sublane) * sublane)
        # Guarantee >= 2 grid steps on non-trivial inputs so both of v7x's
        # TensorCores get work (harmless ~0.35us extra on single-core chips).
        half = _round_up(-(-R // 2), sublane)
        if half < R:
            tile_rows = min(tile_rows, half)
    if tile_rows >= R:
        tile_rows = R                          # one full block (always legal)
    else:
        tile_rows = max(sublane, (tile_rows // sublane) * sublane)

    # Explicit scoped-VMEM limit: padded double-buffered working set + headroom.
    working = 2 * _round_up(tile_rows, sublane) * bytes_per_row
    vmem_limit = int(min(phys_vmem, working + max(8 << 20, working // 2)))
    vmem_limit = max(vmem_limit, 16 << 20)

    grid = (pl.cdiv(R, tile_rows),)

    out2d = pl.pallas_call(
        kernel,
        out_shape=jax.ShapeDtypeStruct((R, d_out), x.dtype),
        grid=grid,
        in_specs=[
            pl.BlockSpec((tile_rows, D), lambda i: (i, 0)),
            pl.BlockSpec((tile_rows, d_pe), lambda i: (i, 0)),
        ],
        out_specs=pl.BlockSpec((tile_rows, d_out), lambda i: (i, 0)),
        compiler_params=pltpu.CompilerParams(
            dimension_semantics=("parallel",),
            vmem_limit_bytes=vmem_limit),
    )(x2d, pe)
    return out2d.reshape(L, N, d_out)


# ----------------------------------------------------------------------------
# Pure-numpy reference (float64 PE, same loop structure as the PyTorch code).
# ----------------------------------------------------------------------------
def _reference(x, depth=256, concatenate=True):
    x_np = np.asarray(x)
    L, N, D = x_np.shape
    d = depth if concatenate else D
    pes = np.zeros((L, d), dtype=np.float64)
    with np.errstate(over="ignore", divide="ignore"):
        for t in range(L):
            for k in range(d // 2):
                w = 1.0 / (np.power(10.0, 2.0 * k) / d)
                pes[t, 2 * k] = np.sin(w * t)
                pes[t, 2 * k + 1] = np.cos(w * t)
    pes = np.broadcast_to(pes[:, None, :], (L, N, d)).astype(x_np.dtype)
    if concatenate:
        return np.concatenate([x_np, pes], axis=2)
    return x_np + pes


if __name__ == "__main__":
    key = jax.random.PRNGKey(0)

    # --- small shapes, unaligned-D concat path + add path --------------------
    L, N, D = 8, 2, 8
    depth = 16
    x = jax.random.normal(key, (L, N, D), dtype=jnp.float32)

    out_cat = jax.block_until_ready(
        positional_encoder(x, depth=depth, concatenate=True))
    ref_cat = _reference(x, depth=depth, concatenate=True)
    assert out_cat.shape == (L, N, D + depth)
    np.testing.assert_allclose(np.asarray(out_cat), ref_cat, rtol=1e-5, atol=1e-5)

    out_add = jax.block_until_ready(
        positional_encoder(x, depth=depth, concatenate=False))
    ref_add = _reference(x, depth=depth, concatenate=False)
    assert out_add.shape == (L, N, D)
    np.testing.assert_allclose(np.asarray(out_add), ref_add, rtol=1e-5, atol=1e-5)

    # --- bigger shapes: aligned-D two-store concat, multi-tile grids ---------
    L2, N2, D2, depth2 = 40, 4, 128, 256
    x2 = jax.random.normal(jax.random.PRNGKey(1), (L2, N2, D2), dtype=jnp.float32)
    ref2_cat = _reference(x2, depth=depth2, concatenate=True)
    ref2_add = _reference(x2, depth=depth2, concatenate=False)

    # forced small tile -> 10 grid steps (exercises overhang + pipelining)
    out2_cat = jax.block_until_ready(
        positional_encoder(x2, depth=depth2, concatenate=True, tile_rows=16))
    np.testing.assert_allclose(np.asarray(out2_cat), ref2_cat, rtol=1e-5, atol=1e-5)

    # default auto-tiling -> >= 2 tiles (megacore split path)
    out2_cat_auto = jax.block_until_ready(
        positional_encoder(x2, depth=depth2, concatenate=True))
    np.testing.assert_allclose(np.asarray(out2_cat_auto), ref2_cat, rtol=1e-5, atol=1e-5)

    out2_add = jax.block_until_ready(
        positional_encoder(x2, depth=depth2, concatenate=False, tile_rows=16))
    np.testing.assert_allclose(np.asarray(out2_add), ref2_add, rtol=1e-5, atol=1e-5)

    out2_add_auto = jax.block_until_ready(
        positional_encoder(x2, depth=depth2, concatenate=False))
    np.testing.assert_allclose(np.asarray(out2_add_auto), ref2_add, rtol=1e-5, atol=1e-5)

    print("KERNEL_OK")
</pallas_src>

<mosaic_0001>
module attributes {stable_mosaic.version = 11 : i64} {
  func.func @_concat_kernel(%arg0: i32, %arg1: memref<8x8xf32, #tpu.memory_space<vmem>>, %arg2: memref<8x16xf32, #tpu.memory_space<vmem>>, %arg3: memref<8x24xf32, #tpu.memory_space<vmem>>) attributes {dimension_semantics = [#tpu.dimension_semantics<parallel>], iteration_bounds = array<i64: 2>, scalar_prefetch = 0 : i64, scratch_operands = 0 : i64, tpu.core_type = #tpu.core_type<tc>, window_params = [{transform_indices = @transform_0, window_bounds = array<i64: 8, 8>}, {transform_indices = @transform_1, window_bounds = array<i64: 8, 16>}, {transform_indices = @transform_2, window_bounds = array<i64: 8, 24>}]} {
    %c0 = arith.constant 0 : index
    %c0_0 = arith.constant 0 : index
    %0 = vector.load %arg1[%c0, %c0_0] : memref<8x8xf32, #tpu.memory_space<vmem>>, vector<8x8xf32>
    %c0_1 = arith.constant 0 : index
    %c0_2 = arith.constant 0 : index
    %1 = vector.load %arg2[%c0_1, %c0_2] : memref<8x16xf32, #tpu.memory_space<vmem>>, vector<8x16xf32>
    %2 = tpu.concatenate %0, %1 in 1 : vector<8x8xf32>, vector<8x16xf32> -> vector<8x24xf32>
    %c0_3 = arith.constant 0 : index
    %c0_4 = arith.constant 0 : index
    %3 = vector.load %arg3[%c0_3, %c0_4] : memref<8x24xf32, #tpu.memory_space<vmem>>, vector<8x24xf32>
    tpu.vector_store %arg3[%c0_3, %c0_4], %2 {strides = array<i32>} : memref<8x24xf32, #tpu.memory_space<vmem>>, vector<8x24xf32>,
    return
  }
  func.func @transform_0(%arg0: i32) -> (i32, i32) {
    %c0_i32 = arith.constant 0 : i32
    %c0_i32_0 = arith.constant 0 : i32
    return %arg0, %c0_i32 : i32, i32
  }
  func.func @transform_1(%arg0: i32) -> (i32, i32) {
    %c0_i32 = arith.constant 0 : i32
    %c0_i32_0 = arith.constant 0 : i32
    return %arg0, %c0_i32 : i32, i32
  }
  func.func @transform_2(%arg0: i32) -> (i32, i32) {
    %c0_i32 = arith.constant 0 : i32
    %c0_i32_0 = arith.constant 0 : i32
    return %arg0, %c0_i32 : i32, i32
  }
}

</mosaic_0001>

<bundles_post_ra>
// kernel: tpu_custom_call.1
= control target key start
LH: loop header
LB: loop body
LE: loop exit
PB: predicated region body
PF: predicated region fallthrough
CT: control target
= control target key end

     0   :  { %7 = vsyncpa [#allocation3], 0  ;;  %s486_s0 = inlined_call_operand.vmem [shape: f32[16,8], index: 0, kind: input, shape index: {}]   ;;  %s487_s1 = inlined_call_operand.vmem [shape: f32[16,16], index: 1, kind: input, shape index: {}]   ;;  %s488_s2 = inlined_call_operand.hbm [shape: f32[16,24], index: 2, kind: output, shape index: {}]  }
   0x1   :  { %9 = vsyncpa [#allocation3 + $0x1], 0  ;;  %s383_s9 = smov 0   ;;  %s385_s10 = smov 0  }
   0x2   :  { %s387_s11 = smov 0   ;;  %s389_s12 = smov 0  }
   0x3 LB: > { %s404_s13 = sadd.s32 4294967295, %s364_s12   ;;  %s251_s14 = sadd.s32 4294967294, %s364_s12   ;;  %s364_s12 = sphi %s389_s12, %s494_s12   ;;  %s360_s11 = sphi %s387_s11, %s493_s11   ;;  %s356_s10 = sphi %s385_s10, %s492_s10   ;;  %s352_s9 = sphi %s383_s9, %s491_s9  }
   0x4   : > { %s408_s15 = sadd.s32 1, %s364_s12   ;;  %s74_s16 = sadd.s32 1, %s360_s11 }
   0x5   : > { %s71_s17 = ssub.s32 %s364_s12, %s408_s15  ;;  %p84_p0 = scmp.ne.s32.totalorder %s360_s11, %s356_s10 }
   0x6   : > { %p72_p1 = scmp.eq.s32.totalorder %s71_s17, 0  ;;  %p85_p2 = scmp.eq.s32.totalorder %s404_s13, 1 }
   0x7   : > { %p90_p3 = scmp.ne.s32.totalorder %s356_s10, %s352_s9  ;;  %p91_p4 = scmp.eq.s32.totalorder %s251_s14, 1 }
   0x8   : > { %s419_s18 = scalar_select %p72_p1, %s360_s11, %s74_s16  }
   0x9   : > { %p421_p5 = por %p85_p2, %p84_p0  ;;  %p425_p6 = por %p91_p4, %p90_p3 }
   0xa   : > { %p254_p7 = scmp.ge.s32.totalorder %s364_s12, 1  ;;  %p123_p8 = scmp.lt.s32.totalorder %s364_s12, 3 }
   0xc   : > { %p124_p9 = pnand %p254_p7, %p123_p8 }
   0xd   : > { %p148_p10 = scmp.lt.s32.totalorder (!%p124_p9), %s404_s13, 1  ;;  %s366_s26 = smov (!%p124_p9), 8   ;;  %vm162_vm0 = vcmask (!%p124_p9), 64512   ;;  %vm164_vm1 = vcmask (!%p124_p9), 195584  }
   0xe   : > { %127 = sbr.rel (%p124_p9) target bundleno = 156 (0x9c), region = 28  ;;  %s145_s27 = sand.u32 (!%p124_p9), 1, %s356_s10  }
   0xf   : > { %s255_s28 = sshll.u32 (!%p124_p9), %s145_s27, 3  ;;  %s259_s4 = sshll.u32 (!%p124_p9), %s404_s13, 7 }
  0x10   : > { %s147_s5 = scalar_lea.vmem (!%p124_p9), [#allocation2], %s255_s28  ;;  %s444_s14 = scalar_lea.hbm (!%p124_p9), %s488_s2, %s259_s4 }
  0x11   : > { %s180_s6 = sshll.u32 (!%p124_p9), %s147_s5, 4  ;;  %s167_s16 = scalar_lea.sflag (!%p124_p9), [#allocation3], %s145_s27  ;;  %s446_s6 = int_to_ptr.vmem [resolvable:$true] %s180_s6 }
  0x12   : > { %s367_s17 = smov (!%p124_p9), [#allocation2]  }
  0x15   : > { %s149_s21 = scalar_select %p148_p10, %s404_s13, 1 }
  0x16   : > { %s302_s13 = scalar_lea.vmem %s446_s6, 128 }
  0x17   : > { %s256_s22 = sshll.u32 %s149_s21, 3  ;;  %p303_p11 = scmp.ne.s32.totalorder %s446_s6, %s302_s13 }
  0x18   : > { %s155_s25 = scalar_lea.vmem %s487_s1, %s256_s22  ;;  %s151_s3 = scalar_lea.vmem %s486_s0, %s256_s22 }
  0x19   : > { %v157_v0 = vld [vmem:[%s155_s25] sm:$0xff]  ;;  %p304_p12 = pnand %p303_p11, %p421_p5  ;;  %s306_s21 = sshll.u32 %s367_s17, 4  ;;  %s307_s21 = int_to_ptr.vmem [resolvable:$false] %s306_s21 }
  0x1a   : > { %159 = vrot.lane.b32.xlu0 %v157_v0, %s366_s26  ;;  %v156_v1 = vld [vmem:[%s151_s3] sm:$0xff]  ;;  %s308_s22 = scalar_lea.vmem %s307_s21, 256  ;;  %p309_p0 = scmp.lt.s32.totalorder %s446_s6, %s307_s21 }
  0x1b   : > { %p305_p13 = pneg %p304_p12  ;;  %p310_p1 = scmp.lt.s32.totalorder %s308_s22, %s302_s13 }
  0x1d   : > { %p311_p2 = por %p310_p1, %p309_p0 }
  0x1f   : > { %p312_p3 = pnand %p311_p2, %p305_p13 }
  0x8c   : > { %v160_v2 = vpop.permute.xlu0 %159 }
  0x8d   : > { %v163_v3 = vsel %vm162_vm0, %v156_v1, %v160_v2 }
  0x8e   : > { %165 = vst.msk [vmem:[%s147_s5] sm:$0xff] %vm164_vm1, %v163_v3 }
  0x8f   : > { %315 = shalt.err (!%p312_p3)
}
  0x90   : > { %s316_s23 = scalar_lea.hbm %s444_s14, 128  ;;  %s320_s26 = scalar_lea.hbm %s488_s2, 256 }
  0x91   : > { %p317_p4 = scmp.ne.s32.totalorder %s444_s14, %s316_s23  ;;  %p321_p9 = scmp.lt.u32.totalorder %s444_s14, %s488_s2 }
  0x92   : > { %p322_p10 = scmp.lt.u32.totalorder %s320_s26, %s316_s23  ;;  %p324_p12 = scmp.lt.u32.totalorder %s316_s23, %s444_s14 }
  0x93   : > { %p318_p7 = pnand %p317_p4, %p421_p5 }
  0x94   : > { %p323_p11 = por %p322_p10, %p321_p9 }
  0x95   : > { %p319_p8 = pneg %p318_p7 }
  0x96   : > { %p325_p13 = por %p324_p12, %p323_p11 }
  0x98   : > { %p326_p0 = pnand %p325_p13, %p319_p8 }
  0x9a   : > { %329 = shalt.err (!%p326_p0)
}
  0x9b   : > { %262 = dma.vmem_to_hbm [thread:$0]  (%p421_p5), %s446_s6, 128, %s444_s14, %s167_s16  }
  0x9c PF: > { %p268_p1 = scmp.ge.s32.totalorder %s364_s12, 2  ;;  %s192_s29 = sand.u32 1, %s352_s9  }
  0x9d   : > { %s193_s30 = scalar_lea.sflag [#allocation3], %s192_s29 }
  0x9e   : > { %p265_p2 = pnand %p268_p1, %p425_p6 }
  0xa0   : > { %347 = dma.done.wait (!%p265_p2), %s193_s30, 128  }
  0xa1   : > { %349 = vsyncadd (!%p265_p2), %s193_s30, 4294967168  ;;  %p12_p3 = scmp.ge.s32.totalorder %s408_s15, 4   ;;  %s491_s9 = smov %s356_s10 }
  0xa2   : > { %s492_s10 = smov %s360_s11  ;;  %s493_s11 = smov %s419_s18 }
  0xa3   : > { %s494_s12 = smov %s408_s15  ;;  %14 = sbr.rel (!%p12_p3) target bundleno = 3 (0x3), region = 66 }
  0xaa   :  { %198 = vsyncpa [#allocation3], 1 }
  0xab   :  { %200 = vsyncpa [#allocation3 + $0x1], 1 }

</bundles_post_ra>
